<compile_context>
chip_gen: v7x
topology: tpu7x:2x2x1
jax: 0.10.0
libtpu: 0.0.40
codegen_flags: <defaults>
</compile_context>

<pallas_src>
import math
import functools

import jax
import jax.numpy as jnp
from jax.experimental import pallas as pl
from jax.experimental.pallas import tpu as pltpu


# ----------------------------- helpers ---------------------------------------

def _round_up(n: int, m: int) -> int:
    return ((n + m - 1) // m) * m


def _cdiv(a: int, b: int) -> int:
    return -(-a // b)


def _itemsize(dt) -> int:
    return jnp.dtype(dt).itemsize


# ----------------------------- fused MLP kernel ------------------------------

def _make_mlp_kernel(num_layers: int, compute_dtype):
    """Kernel refs = (x_ref, w0, b0, w1, b1, ..., o_ref). Chains relu(x@W+b)."""

    def kernel(x_ref, *refs):
        o_ref = refs[-1]
        wb = refs[:-1]
        # In-kernel narrow cast (no-op if the wrapper already padded/cast to bf16).
        h = x_ref[...].astype(compute_dtype)            # (tile_m, Din_pad)
        for l in range(num_layers):                     # unrolled at trace time
            w = wb[2 * l][...]                          # (Din_pad, Dout_pad) compute dtype
            b = wb[2 * l + 1][...]                      # (1, Dout_pad) f32
            acc = jnp.dot(h, w, preferred_element_type=jnp.float32)   # MXU, f32 acc
            acc = jnp.maximum(acc + b, 0.0)             # bias + ReLU in f32 (VPU)
            if l + 1 < num_layers:
                h = acc.astype(compute_dtype)           # keep next matmul input narrow
            else:
                h = acc
        o_ref[...] = h.astype(o_ref.dtype)

    return kernel


def mlp_fused(x, weights, biases, *, tile_m, compute_dtype, out_dtype,
              single_buffer_weights, vmem_capacity_bytes):
    """Single pallas_call computing the whole Linear+ReLU stack.

    x:       (B_pad, Din_pad), B_pad % tile_m == 0 (any float dtype; cast in-kernel)
    weights: list of (Dk_pad, Dk+1_pad) compute dtype (pre-transposed, zero padded)
    biases:  list of (1, Dk+1_pad) f32 (zero padded)
    """
    B, Din = x.shape
    L = len(weights)
    Dout = weights[-1].shape[1]
    assert B % tile_m == 0
    grid = (B // tile_m,)

    in_specs = [pl.BlockSpec((tile_m, Din), lambda i: (i, 0))]
    for w, b in zip(weights, biases):
        if single_buffer_weights:
            # Constant index_map -> resident across grid steps; Buffered(1) avoids the
            # default double-buffer allocation (weights never re-DMA anyway).
            in_specs.append(pl.BlockSpec(w.shape, lambda i: (0, 0),
                                         pipeline_mode=pl.Buffered(1)))
            in_specs.append(pl.BlockSpec(b.shape, lambda i: (0, 0),
                                         pipeline_mode=pl.Buffered(1)))
        else:
            in_specs.append(pl.BlockSpec(w.shape, lambda i: (0, 0)))
            in_specs.append(pl.BlockSpec(b.shape, lambda i: (0, 0)))
    out_specs = pl.BlockSpec((tile_m, Dout), lambda i: (i, 0))

    # Cost estimate for XLA's scheduler.
    wb_bytes = sum(w.size * _itemsize(w.dtype) + b.size * _itemsize(b.dtype)
                   for w, b in zip(weights, biases))
    flops = sum(2 * B * w.shape[0] * w.shape[1] for w in weights)
    bytes_accessed = (x.size * _itemsize(x.dtype) + wb_bytes
                      + B * Dout * _itemsize(out_dtype))

    # Exact VMEM footprint: double-buffered x/out tiles, (single-buffered) weights,
    # plus the live intermediate activation (f32 accumulator + narrow h).
    x_tile_bytes = tile_m * Din * _itemsize(x.dtype)
    out_tile_bytes = tile_m * Dout * _itemsize(out_dtype)
    max_width = max(w.shape[1] for w in weights)
    act_bytes = tile_m * max_width * (4 + _itemsize(compute_dtype))
    wb_mult = 1 if single_buffer_weights else 2
    needed = 2 * x_tile_bytes + 2 * out_tile_bytes + wb_mult * wb_bytes + act_bytes
    ceiling = max(int(vmem_capacity_bytes * 7 // 8), 32 * 1024 * 1024)
    vmem_limit = int(min(max(int(needed * 1.25), 32 * 1024 * 1024), ceiling))
    # TODO(synk): if `needed` ever exceeds `ceiling` (very large mlp_dims), stream
    # weight N-blocks across an extra grid axis instead of keeping the full stack
    # resident; current clamp keeps compilation alive but may spill.

    operands = [x]
    for w, b in zip(weights, biases):
        operands.extend((w, b))

    return pl.pallas_call(
        _make_mlp_kernel(L, compute_dtype),
        out_shape=jax.ShapeDtypeStruct((B, Dout), out_dtype),
        grid_spec=pltpu.PrefetchScalarGridSpec(
            num_scalar_prefetch=0,
            grid=grid,
            in_specs=in_specs,
            out_specs=out_specs,
        ),
        compiler_params=pltpu.CompilerParams(
            dimension_semantics=("parallel",),   # batch tiles shard across TCs (v7x)
            vmem_limit_bytes=vmem_limit,
        ),
        cost_estimate=pl.CostEstimate(
            flops=flops, transcendentals=0, bytes_accessed=bytes_accessed),
    )(*operands)


# ----------------------------- module wrapper ---------------------------------

class ReviewEmbeddingModulePallas:
    """JAX/Pallas equivalent of the PyTorch ReviewEmbeddingModule (Linear+ReLU stack)."""

    LANE = 128        # feature dims padded to multiples of 128 lanes
    ROW_ALIGN = 16    # batch tile multiple (bf16 sublane packing)

    def __init__(self, embedding_dim: int, mlp_dims: list, key,
                 compute_dtype=jnp.bfloat16, out_dtype=jnp.float32,
                 small_problem_rows: int = 0):
        self.embedding_dim = embedding_dim
        self.compute_dtype = compute_dtype
        self.out_dtype = out_dtype
        # Optional tiny-batch jnp fallback threshold (0 = always use the Pallas kernel).
        self.small_problem_rows = small_problem_rows
        self.output_dim = mlp_dims[-1] if mlp_dims else embedding_dim

        # f32 master weights (nn.Linear-style init), stored pre-transposed (in, out).
        self.params_f32 = []
        input_dim = embedding_dim
        for dim in mlp_dims:
            key, kw, kb = jax.random.split(key, 3)
            bound = 1.0 / math.sqrt(input_dim)
            w = jax.random.uniform(kw, (input_dim, dim), jnp.float32, -bound, bound)
            b = jax.random.uniform(kb, (dim,), jnp.float32, -bound, bound)
            self.params_f32.append((w, b))
            input_dim = dim

        # Pre-padded, pre-cast kernel operands (done once at init, not per call).
        self.in_pad = _round_up(max(embedding_dim, 1), self.LANE)
        self.w_pad, self.b_pad = [], []
        din_pad = self.in_pad
        for w, b in self.params_f32:
            dout_pad = _round_up(w.shape[1], self.LANE)
            wp = jnp.zeros((din_pad, dout_pad), jnp.float32)
            wp = wp.at[: w.shape[0], : w.shape[1]].set(w).astype(compute_dtype)
            bp = jnp.zeros((1, dout_pad), jnp.float32).at[0, : b.shape[0]].set(b)
            self.w_pad.append(wp)
            self.b_pad.append(bp)
            din_pad = dout_pad
        self.out_pad = din_pad

        # Generation-aware limits: v5e/v6e have 128 MiB VMEM (big tiles amortize the
        # ~0.35 us per-grid-step cost); v7x has 64 MiB/TC so stay conservative.
        try:
            self._vmem_capacity = int(pltpu.get_tpu_info().vmem_capacity_bytes)
        except Exception:
            self._vmem_capacity = 64 * 1024 * 1024   # conservative (v7x per-TC)
        self.max_tile_m = 2048 if self._vmem_capacity >= 96 * 1024 * 1024 else 512

        self._single_buffer_weights = True
        self._forward_jit = jax.jit(self._forward_padded,
                                    static_argnames=("tile_m", "single_buffer"))
        self._ref_matched_jit = jax.jit(self.reference_matched)

    # ---- tile planning --------------------------------------------------------
    def _tile_plan(self, batch: int) -> int:
        """tile_m: multiple of ROW_ALIGN, <= max_tile_m, row padding kept tiny,
        and >= 2 grid steps whenever the batch allows (keeps both v7x TCs busy)."""
        n_tiles = _cdiv(batch, self.max_tile_m)
        if batch >= 2 * self.ROW_ALIGN:
            n_tiles = max(n_tiles, 2)
        return min(self.max_tile_m,
                   _round_up(_cdiv(batch, n_tiles), self.ROW_ALIGN))

    # ---- jitted forward (pad + cast + kernel + slice fused under one jit) ------
    def _forward_padded(self, embeddings, *, tile_m, single_buffer):
        B, D = embeddings.shape
        grid_m = _cdiv(B, tile_m)
        B_pad = grid_m * tile_m
        if B_pad != B or self.in_pad != D:
            x = jnp.zeros((B_pad, self.in_pad), self.compute_dtype)
            x = x.at[:B, :D].set(embeddings.astype(self.compute_dtype))
        else:
            # Already lane/tile aligned: skip the pad pass entirely; the f32 -> bf16
            # cast happens inside the kernel (one less HBM round trip).
            x = embeddings
        y = mlp_fused(x, self.w_pad, self.b_pad, tile_m=tile_m,
                      compute_dtype=self.compute_dtype, out_dtype=self.out_dtype,
                      single_buffer_weights=single_buffer,
                      vmem_capacity_bytes=self._vmem_capacity)
        if y.shape != (B, self.output_dim):
            y = y[:B, : self.output_dim]
        return y

    def __call__(self, embeddings):
        if not self.params_f32:
            return embeddings  # empty mlp_dims -> identity, matches PyTorch module
        B, D = embeddings.shape
        assert D == self.embedding_dim
        if B <= self.small_problem_rows:
            # Tiny problems: XLA's fused dot chain beats kernel launch + pad/slice.
            return self._ref_matched_jit(embeddings).astype(self.out_dtype)
        tile_m = self._tile_plan(B)
        try:
            return self._forward_jit(embeddings, tile_m=tile_m,
                                     single_buffer=self._single_buffer_weights)
        except Exception:
            if self._single_buffer_weights:
                # pl.Buffered(1) unsupported on this jax/libtpu: fall back to default
                # double-buffered weights (correctness unchanged, 2x weight VMEM).
                self._single_buffer_weights = False
                return self._forward_jit(embeddings, tile_m=tile_m,
                                         single_buffer=False)
            raise

    # ---- references for validation --------------------------------------------
    def reference_matched(self, embeddings):
        """Pure-JAX reference using the same bf16-matmul / f32-accumulate math."""
        h = embeddings.astype(self.compute_dtype)
        n = len(self.params_f32)
        for l, (w, b) in enumerate(self.params_f32):
            acc = jnp.dot(h, w.astype(self.compute_dtype),
                          preferred_element_type=jnp.float32)
            acc = jnp.maximum(acc + b, 0.0)
            h = acc.astype(self.compute_dtype) if l + 1 < n else acc
        return h

    def reference_f32(self, embeddings):
        """Full-precision reference of the original PyTorch module semantics."""
        x = embeddings
        for w, b in self.params_f32:
            x = jnp.maximum(x @ w + b, 0.0)
        return x


# ----------------------------- demo / self-test --------------------------------

if __name__ == "__main__":
    key = jax.random.PRNGKey(0)
    key, k_in, k_mod = jax.random.split(key, 3)

    batch = 8
    embedding_dim = 32
    mlp_dims = [64, 32]

    module = ReviewEmbeddingModulePallas(embedding_dim, mlp_dims, k_mod)
    embeddings = jax.random.normal(k_in, (batch, embedding_dim), jnp.float32)

    out = jax.block_until_ready(module(embeddings))

    assert out.shape == (batch, module.output_dim)
    assert out.dtype == jnp.float32

    # Exact-math oracle (same bf16 matmul / f32 accumulate path as the kernel).
    ref_matched = module.reference_matched(embeddings)
    assert jnp.allclose(out, ref_matched, atol=2e-3, rtol=2e-3), \
        "mismatch vs bf16-matched reference"

    # Sanity vs full-precision PyTorch-equivalent math (loose bf16 tolerance).
    ref_f32 = module.reference_f32(embeddings)
    assert jnp.allclose(out, ref_f32, atol=3e-2, rtol=3e-2), \
        "mismatch vs f32 reference beyond bf16 tolerance"

    print("KERNEL_OK")
</pallas_src>

<mosaic_0001>
module attributes {stable_mosaic.version = 11 : i64} {
  func.func @kernel(%arg0: i32, %arg1: memref<16x128xbf16, #tpu.memory_space<vmem>>, %arg2: memref<128x128xbf16, #tpu.memory_space<vmem>>, %arg3: memref<1x128xf32, #tpu.memory_space<vmem>>, %arg4: memref<128x128xbf16, #tpu.memory_space<vmem>>, %arg5: memref<1x128xf32, #tpu.memory_space<vmem>>, %arg6: memref<16x128xf32, #tpu.memory_space<vmem>>) attributes {dimension_semantics = [#tpu.dimension_semantics<parallel>], iteration_bounds = array<i64: 1>, scalar_prefetch = 0 : i64, scratch_operands = 0 : i64, tpu.core_type = #tpu.core_type<tc>, window_params = [{transform_indices = @transform_0, window_bounds = array<i64: 16, 128>}, {pipeline_mode = #tpu.pipeline_mode<synchronous>, transform_indices = @transform_1, window_bounds = array<i64: 128, 128>}, {pipeline_mode = #tpu.pipeline_mode<synchronous>, transform_indices = @transform_2, window_bounds = array<i64: 1, 128>}, {pipeline_mode = #tpu.pipeline_mode<synchronous>, transform_indices = @transform_3, window_bounds = array<i64: 128, 128>}, {pipeline_mode = #tpu.pipeline_mode<synchronous>, transform_indices = @transform_4, window_bounds = array<i64: 1, 128>}, {transform_indices = @transform_5, window_bounds = array<i64: 16, 128>}]} {
    %c0 = arith.constant 0 : index
    %c0_0 = arith.constant 0 : index
    %0 = vector.load %arg1[%c0, %c0_0] : memref<16x128xbf16, #tpu.memory_space<vmem>>, vector<16x128xbf16>
    %c0_1 = arith.constant 0 : index
    %c0_2 = arith.constant 0 : index
    %1 = vector.load %arg2[%c0_1, %c0_2] : memref<128x128xbf16, #tpu.memory_space<vmem>>, vector<128x128xbf16>
    %c0_3 = arith.constant 0 : index
    %c0_4 = arith.constant 0 : index
    %2 = vector.load %arg3[%c0_3, %c0_4] : memref<1x128xf32, #tpu.memory_space<vmem>>, vector<1x128xf32>
    %cst = arith.constant dense<0.000000e+00> : vector<16x128xf32>
    %3 = tpu.matmul %0, %1, %cst {dimension_numbers = #tpu.dot_dimension_numbers<[1], [0], [0], [1], [0, 0, 1, 1], [], []>} : vector<16x128xbf16>, vector<128x128xbf16>, vector<16x128xf32> -> vector<16x128xf32>
    %4 = vector.broadcast %2 : vector<1x128xf32> to vector<16x128xf32>
    %5 = arith.addf %3, %4 : vector<16x128xf32>
    %cst_5 = arith.constant 0.000000e+00 : f32
    %6 = vector.broadcast %cst_5 : f32 to vector<16x128xf32>
    %7 = arith.maximumf %5, %6 : vector<16x128xf32>
    %8 = arith.truncf %7 : vector<16x128xf32> to vector<16x128xbf16>
    %c0_6 = arith.constant 0 : index
    %c0_7 = arith.constant 0 : index
    %9 = vector.load %arg4[%c0_6, %c0_7] : memref<128x128xbf16, #tpu.memory_space<vmem>>, vector<128x128xbf16>
    %c0_8 = arith.constant 0 : index
    %c0_9 = arith.constant 0 : index
    %10 = vector.load %arg5[%c0_8, %c0_9] : memref<1x128xf32, #tpu.memory_space<vmem>>, vector<1x128xf32>
    %cst_10 = arith.constant dense<0.000000e+00> : vector<16x128xf32>
    %11 = tpu.matmul %8, %9, %cst_10 {dimension_numbers = #tpu.dot_dimension_numbers<[1], [0], [0], [1], [0, 0, 1, 1], [], []>} : vector<16x128xbf16>, vector<128x128xbf16>, vector<16x128xf32> -> vector<16x128xf32>
    %12 = vector.broadcast %10 : vector<1x128xf32> to vector<16x128xf32>
    %13 = arith.addf %11, %12 : vector<16x128xf32>
    %cst_11 = arith.constant 0.000000e+00 : f32
    %14 = vector.broadcast %cst_11 : f32 to vector<16x128xf32>
    %15 = arith.maximumf %13, %14 : vector<16x128xf32>
    %c0_12 = arith.constant 0 : index
    %c0_13 = arith.constant 0 : index
    %16 = vector.load %arg6[%c0_12, %c0_13] : memref<16x128xf32, #tpu.memory_space<vmem>>, vector<16x128xf32>
    tpu.vector_store %arg6[%c0_12, %c0_13], %15 {strides = array<i32>} : memref<16x128xf32, #tpu.memory_space<vmem>>, vector<16x128xf32>,
    return
  }
  func.func @transform_0(%arg0: i32) -> (i32, i32) {
    %c0_i32 = arith.constant 0 : i32
    %c0_i32_0 = arith.constant 0 : i32
    return %arg0, %c0_i32 : i32, i32
  }
  func.func @transform_1(%arg0: i32) -> (i32, i32) {
    %c0_i32 = arith.constant 0 : i32
    %c0_i32_0 = arith.constant 0 : i32
    %c0_i32_1 = arith.constant 0 : i32
    return %c0_i32, %c0_i32_0 : i32, i32
  }
  func.func @transform_2(%arg0: i32) -> (i32, i32) {
    %c0_i32 = arith.constant 0 : i32
    %c0_i32_0 = arith.constant 0 : i32
    %c0_i32_1 = arith.constant 0 : i32
    return %c0_i32, %c0_i32_0 : i32, i32
  }
  func.func @transform_3(%arg0: i32) -> (i32, i32) {
    %c0_i32 = arith.constant 0 : i32
    %c0_i32_0 = arith.constant 0 : i32
    %c0_i32_1 = arith.constant 0 : i32
    return %c0_i32, %c0_i32_0 : i32, i32
  }
  func.func @transform_4(%arg0: i32) -> (i32, i32) {
    %c0_i32 = arith.constant 0 : i32
    %c0_i32_0 = arith.constant 0 : i32
    %c0_i32_1 = arith.constant 0 : i32
    return %c0_i32, %c0_i32_0 : i32, i32
  }
  func.func @transform_5(%arg0: i32) -> (i32, i32) {
    %c0_i32 = arith.constant 0 : i32
    %c0_i32_0 = arith.constant 0 : i32
    return %arg0, %c0_i32 : i32, i32
  }
}

module attributes {stable_mosaic.version = 11 : i64} {
  func.func @kernel(%arg0: i32, %arg1: memref<16x128xbf16, #tpu.memory_space<vmem>>, %arg2: memref<128x128xbf16, #tpu.memory_space<vmem>>, %arg3: memref<1x128xf32, #tpu.memory_space<vmem>>, %arg4: memref<128x128xbf16, #tpu.memory_space<vmem>>, %arg5: memref<1x128xf32, #tpu.memory_space<vmem>>, %arg6: memref<16x128xf32, #tpu.memory_space<vmem>>) attributes {dimension_semantics = [#tpu.dimension_semantics<parallel>], iteration_bounds = array<i64: 1>, scalar_prefetch = 0 : i64, scratch_operands = 0 : i64, tpu.core_type = #tpu.core_type<tc>, window_params = [{transform_indices = @transform_0, window_bounds = array<i64: 16, 128>}, {pipeline_mode = #tpu.pipeline_mode<synchronous>, transform_indices = @transform_1, window_bounds = array<i64: 128, 128>}, {pipeline_mode = #tpu.pipeline_mode<synchronous>, transform_indices = @transform_2, window_bounds = array<i64: 1, 128>}, {pipeline_mode = #tpu.pipeline_mode<synchronous>, transform_indices = @transform_3, window_bounds = array<i64: 128, 128>}, {pipeline_mode = #tpu.pipeline_mode<synchronous>, transform_indices = @transform_4, window_bounds = array<i64: 1, 128>}, {transform_indices = @transform_5, window_bounds = array<i64: 16, 128>}]} {
    %c0 = arith.constant 0 : index
    %c0_0 = arith.constant 0 : index
    %0 = vector.load %arg1[%c0, %c0_0] : memref<16x128xbf16, #tpu.memory_space<vmem>>, vector<16x128xbf16>
    %c0_1 = arith.constant 0 : index
    %c0_2 = arith.constant 0 : index
    %1 = vector.load %arg2[%c0_1, %c0_2] : memref<128x128xbf16, #tpu.memory_space<vmem>>, vector<128x128xbf16>
    %c0_3 = arith.constant 0 : index
    %c0_4 = arith.constant 0 : index
    %2 = vector.load %arg3[%c0_3, %c0_4] : memref<1x128xf32, #tpu.memory_space<vmem>>, vector<1x128xf32>
    %cst = arith.constant dense<0.000000e+00> : vector<16x128xf32>
    %3 = tpu.matmul %0, %1, %cst {dimension_numbers = #tpu.dot_dimension_numbers<[1], [0], [0], [1], [0, 0, 1, 1], [], []>} : vector<16x128xbf16>, vector<128x128xbf16>, vector<16x128xf32> -> vector<16x128xf32>
    %4 = vector.broadcast %2 : vector<1x128xf32> to vector<16x128xf32>
    %5 = arith.addf %3, %4 : vector<16x128xf32>
    %cst_5 = arith.constant 0.000000e+00 : f32
    %6 = vector.broadcast %cst_5 : f32 to vector<16x128xf32>
    %7 = arith.maximumf %5, %6 : vector<16x128xf32>
    %8 = arith.truncf %7 : vector<16x128xf32> to vector<16x128xbf16>
    %c0_6 = arith.constant 0 : index
    %c0_7 = arith.constant 0 : index
    %9 = vector.load %arg4[%c0_6, %c0_7] : memref<128x128xbf16, #tpu.memory_space<vmem>>, vector<128x128xbf16>
    %c0_8 = arith.constant 0 : index
    %c0_9 = arith.constant 0 : index
    %10 = vector.load %arg5[%c0_8, %c0_9] : memref<1x128xf32, #tpu.memory_space<vmem>>, vector<1x128xf32>
    %cst_10 = arith.constant dense<0.000000e+00> : vector<16x128xf32>
    %11 = tpu.matmul %8, %9, %cst_10 {dimension_numbers = #tpu.dot_dimension_numbers<[1], [0], [0], [1], [0, 0, 1, 1], [], []>} : vector<16x128xbf16>, vector<128x128xbf16>, vector<16x128xf32> -> vector<16x128xf32>
    %12 = vector.broadcast %10 : vector<1x128xf32> to vector<16x128xf32>
    %13 = arith.addf %11, %12 : vector<16x128xf32>
    %cst_11 = arith.constant 0.000000e+00 : f32
    %14 = vector.broadcast %cst_11 : f32 to vector<16x128xf32>
    %15 = arith.maximumf %13, %14 : vector<16x128xf32>
    %c0_12 = arith.constant 0 : index
    %c0_13 = arith.constant 0 : index
    %16 = vector.load %arg6[%c0_12, %c0_13] : memref<16x128xf32, #tpu.memory_space<vmem>>, vector<16x128xf32>
    tpu.vector_store %arg6[%c0_12, %c0_13], %15 {strides = array<i32>} : memref<16x128xf32, #tpu.memory_space<vmem>>, vector<16x128xf32>,
    return
  }
  func.func @transform_0(%arg0: i32) -> (i32, i32) {
    %c0_i32 = arith.constant 0 : i32
    %c0_i32_0 = arith.constant 0 : i32
    return %arg0, %c0_i32 : i32, i32
  }
  func.func @transform_1(%arg0: i32) -> (i32, i32) {
    %c0_i32 = arith.constant 0 : i32
    %c0_i32_0 = arith.constant 0 : i32
    %c0_i32_1 = arith.constant 0 : i32
    return %c0_i32, %c0_i32_0 : i32, i32
  }
  func.func @transform_2(%arg0: i32) -> (i32, i32) {
    %c0_i32 = arith.constant 0 : i32
    %c0_i32_0 = arith.constant 0 : i32
    %c0_i32_1 = arith.constant 0 : i32
    return %c0_i32, %c0_i32_0 : i32, i32
  }
  func.func @transform_3(%arg0: i32) -> (i32, i32) {
    %c0_i32 = arith.constant 0 : i32
    %c0_i32_0 = arith.constant 0 : i32
    %c0_i32_1 = arith.constant 0 : i32
    return %c0_i32, %c0_i32_0 : i32, i32
  }
  func.func @transform_4(%arg0: i32) -> (i32, i32) {
    %c0_i32 = arith.constant 0 : i32
    %c0_i32_0 = arith.constant 0 : i32
    %c0_i32_1 = arith.constant 0 : i32
    return %c0_i32, %c0_i32_0 : i32, i32
  }
  func.func @transform_5(%arg0: i32) -> (i32, i32) {
    %c0_i32 = arith.constant 0 : i32
    %c0_i32_0 = arith.constant 0 : i32
    return %arg0, %c0_i32 : i32, i32
  }
}

</mosaic_0001>

<bundles_post_ra>
// kernel: _forward_padded.1
= control target key start
LH: loop header
LB: loop body
LE: loop exit
PB: predicated region body
PF: predicated region fallthrough
CT: control target
= control target key end

     0   :  { %10 = vsyncpa [#allocation3], 0  ;;  %s517_s0 = inlined_call_operand.vmem [shape: bf16[16,128], index: 0, kind: input, shape index: {}]   ;;  %s518_s1 = inlined_call_operand.hbm [shape: bf16[128,128], index: 1, kind: input, shape index: {}]   ;;  %s519_s2 = inlined_call_operand.vmem [shape: f32[1,128], index: 2, kind: input, shape index: {}]   ;;  %s520_s3 = inlined_call_operand.hbm [shape: bf16[128,128], index: 3, kind: input, shape index: {}]   ;;  %s521_s4 = inlined_call_operand.vmem [shape: f32[1,128], index: 4, kind: input, shape index: {}]   ;;  %s522_s5 = inlined_call_operand.vmem [shape: f32[16,128], index: 5, kind: output, shape index: {}]  }
   0x1   :  { %11 = vsyncpa [#allocation5], 0  ;;  %s442_s18 = smov [#allocation2]   ;;  %s394_s22 = scalar_lea.hbm %s518_s1, 1024 }
   0x2   :  { %s19_s19 = sshll.u32 %s442_s18, 4  ;;  %p395_p0 = scmp.ne.s32.totalorder %s518_s1, %s394_s22  ;;  %s20_s19 = int_to_ptr.vmem [resolvable:$true] %s19_s19 }
   0x3   :  { %p398_p1 = scmp.lt.u32.totalorder %s394_s22, %s518_s1 }
   0x5   :  { %p400_p2 = pnand %p398_p1, %p395_p0 }
   0x7   :  { %403 = shalt.err (!%p400_p2)
}
   0x8   :  { %s404_s27 = scalar_lea.vmem %s20_s19, 1024  ;;  %p409_p4 = scmp.lt.s32.totalorder %s20_s19, %s20_s19 }
   0x9   :  { %p405_p3 = scmp.ne.s32.totalorder %s20_s19, %s404_s27  ;;  %p410_p5 = scmp.lt.s32.totalorder %s404_s27, %s404_s27 }
   0xb   :  { %p411_p6 = por %p410_p5, %p409_p4 }
   0xd   :  { %p412_p7 = pnand %p411_p6, %p405_p3 }
   0xf   :  { %415 = shalt.err (!%p412_p7)
}
  0x10   :  { %s443_s28 = smov 64   ;;  %s444_s29 = smov 4  }
  0x11   :  { %25 = dma.hbm_to_vmem [thread:$0]  %s518_s1, 1024, %s20_s19, [#allocation3], %s443_s28, %s443_s28, %s444_s29  }
  0x12   :  { %s445_s7 = smov [#allocation4]   ;;  %s416_s11 = scalar_lea.hbm %s520_s3, 1024 }
  0x13   :  { %s33_s8 = sshll.u32 %s445_s7, 4  ;;  %p417_p8 = scmp.ne.s32.totalorder %s520_s3, %s416_s11  ;;  %s34_s8 = int_to_ptr.vmem [resolvable:$true] %s33_s8 }
  0x14   :  { %p420_p9 = scmp.lt.u32.totalorder %s416_s11, %s520_s3 }
  0x16   :  { %p422_p10 = pnand %p420_p9, %p417_p8 }
  0x18   :  { %425 = shalt.err (!%p422_p10)
}
  0x19   :  { %s426_s16 = scalar_lea.vmem %s34_s8, 1024  ;;  %p431_p12 = scmp.lt.s32.totalorder %s34_s8, %s34_s8 }
  0x1a   :  { %p427_p11 = scmp.ne.s32.totalorder %s34_s8, %s426_s16  ;;  %p432_p13 = scmp.lt.s32.totalorder %s426_s16, %s426_s16 }
  0x1c   :  { %p433_p0 = por %p432_p13, %p431_p12 }
  0x1e   :  { %p434_p1 = pnand %p433_p0, %p427_p11 }
  0x20   :  { %437 = shalt.err (!%p434_p1)
}
  0x21   :  { %39 = dma.hbm_to_vmem [thread:$0]  %s520_s3, 1024, %s34_s8, [#allocation5], %s443_s28, %s443_s28, %s444_s29  }
  0x22   :  { %438 = dma.done.wait [#allocation3], 1024  }
  0x23   :  { %439 = vsyncadd [#allocation3], 4294966272 }
  0x24   :  { %440 = dma.done.wait [#allocation5], 1024  }
  0x25   :  { %441 = vsyncadd [#allocation5], 4294966272  ;;  %v446_v0 = vmov 0.0   ;;  %vm447_vm0 = vmmov 0   ;;  %v377_v1 = vld [vmem:[#allocation2] sm:$0xff]   ;;  %v378_v2 = vld [vmem:[#allocation2 + $0x8] sm:$0xff]  }
  0x26   :  { %331 = vmatprep.subr.bf16.mxu0 %v446_v0  ;;  %347 = vmatprep.mubr.msk.bf16.mxu0 %vm447_vm0, %v446_v0  ;;  %v379_v3 = vld [vmem:[#allocation2 + $0x10] sm:$0xff]   ;;  %v386_v4 = vld [vmem:[#allocation4] sm:$0xff]   ;;  %v380_v5 = vld [vmem:[#allocation2 + $0x18] sm:$0xff]  }
  0x27   :  { %351 = vmatprep.subr.bf16.mxu1 %v446_v0  ;;  %367 = vmatprep.mubr.msk.bf16.mxu1 %vm447_vm0, %v446_v0  ;;  %v387_v6 = vld [vmem:[#allocation4 + $0x8] sm:$0xff]   ;;  %v381_v7 = vld [vmem:[#allocation2 + $0x20] sm:$0xff]   ;;  %v388_v8 = vld [vmem:[#allocation4 + $0x10] sm:$0xff]  }
  0x28   :  { %332 = vmatpush3.bf16.msra.mxu0 %v377_v1  ;;  %352 = vmatpush3.bf16.msra.mxu1 %v386_v4  ;;  %v382_v9 = vld [vmem:[#allocation2 + $0x28] sm:$0xff]   ;;  %v389_v10 = vld [vmem:[#allocation4 + $0x18] sm:$0xff]   ;;  %v383_v11 = vld [vmem:[#allocation2 + $0x30] sm:$0xff]  }
  0x29   :  { %333 = vmatprep.subr.bf16.mxu0 %v446_v0  ;;  %353 = vmatprep.subr.bf16.mxu1 %v446_v0  ;;  %v390_v12 = vld [vmem:[#allocation4 + $0x20] sm:$0xff]   ;;  %v384_v13 = vld [vmem:[#allocation2 + $0x38] sm:$0xff]   ;;  %v391_v14 = vld [vmem:[#allocation4 + $0x28] sm:$0xff]  }
  0x2a   :  { %v385_v15 = vld [vmem:[%s517_s0] sm:$0xff]   ;;  %v392_v16 = vld [vmem:[#allocation4 + $0x30] sm:$0xff]   ;;  %v393_v17 = vld [vmem:[#allocation4 + $0x38] sm:$0xff]  }
  0x2b   :  { %v294_v18 = vld [vmem:[%s519_s2] ss:$0 sm:$0xff] }
  0x2c   :  { %334 = vmatpush3.bf16.msra.mxu0 %v378_v2  ;;  %354 = vmatpush3.bf16.msra.mxu1 %v387_v6  ;;  %v304_v28 = vld [vmem:[%s521_s4] ss:$0 sm:$0xff] }
  0x2d   :  { %335 = vmatprep.subr.bf16.mxu0 %v446_v0  ;;  %355 = vmatprep.subr.bf16.mxu1 %v446_v0 }
  0x30   :  { %336 = vmatpush3.bf16.msra.mxu0 %v379_v3  ;;  %356 = vmatpush3.bf16.msra.mxu1 %v388_v8 }
  0x31   :  { %337 = vmatprep.subr.bf16.mxu0 %v446_v0  ;;  %357 = vmatprep.subr.bf16.mxu1 %v446_v0 }
  0x34   :  { %338 = vmatpush3.bf16.msra.mxu0 %v380_v5  ;;  %358 = vmatpush3.bf16.msra.mxu1 %v389_v10 }
  0x35   :  { %339 = vmatprep.subr.bf16.mxu0 %v446_v0  ;;  %359 = vmatprep.subr.bf16.mxu1 %v446_v0 }
  0x38   :  { %340 = vmatpush3.bf16.msra.mxu0 %v381_v7  ;;  %360 = vmatpush3.bf16.msra.mxu1 %v390_v12 }
  0x39   :  { %341 = vmatprep.subr.bf16.mxu0 %v446_v0  ;;  %361 = vmatprep.subr.bf16.mxu1 %v446_v0 }
  0x3c   :  { %342 = vmatpush3.bf16.msra.mxu0 %v382_v9  ;;  %362 = vmatpush3.bf16.msra.mxu1 %v391_v14 }
  0x3d   :  { %343 = vmatprep.subr.bf16.mxu0 %v446_v0  ;;  %363 = vmatprep.subr.bf16.mxu1 %v446_v0 }
  0x40   :  { %344 = vmatpush3.bf16.msra.mxu0 %v383_v11  ;;  %364 = vmatpush3.bf16.msra.mxu1 %v392_v16 }
  0x41   :  { %345 = vmatprep.subr.bf16.mxu0 %v446_v0  ;;  %365 = vmatprep.subr.bf16.mxu1 %v446_v0 }
  0x44   :  { %346 = vmatpush3.bf16.msra.mxu0 %v384_v13  ;;  %366 = vmatpush3.bf16.msra.mxu1 %v393_v17 }
  0x47   :  { %348 = vmatmul.mubr.bf16.vlgmr.msra.gmra.mrb[0].mxu0 %v385_v15 }
 0x11a   :  { %v162_v19 = vpop.f32.mrb[0].mxu0 }
 0x11b   :  { %v163_v20 = vadd.f32 %v294_v18, %v162_v19  ;;  %v349_v21 = vpop.f32.mrb[1].mxu0 }
 0x11c   :  { %v165_v22 = vpop.f32.mrb[2].mxu0 }
 0x11d   :  { %v166_v23 = vadd.f32 %v294_v18, %v165_v22  ;;  %v350_v24 = vpop.f32.mrb[3].mxu0  ;;  %v169_v25 = vmax.f32 %v163_v20, 0.0 }
 0x11f   :  { %v170_v26 = vmax.f32 %v166_v23, 0.0 }
 0x121   :  { %v171_v27 = vpack.c.bf16 %v170_v26, %v169_v25 }
 0x123   :  { %368 = vmatmul.mubr.bf16.vlgmr.msra.gmra.mrb[0].mxu1 %v171_v27 }
 0x1f6   :  { %v277_v29 = vpop.f32.mrb[0].mxu1 }
 0x1f7   :  { %v278_v30 = vadd.f32 %v304_v28, %v277_v29  ;;  %v369_v31 = vpop.f32.mrb[1].mxu1 }
 0x1f8   :  { %v280_v32 = vpop.f32.mrb[2].mxu1 }
 0x1f9   :  { %v284_v33 = vmax.f32 %v278_v30, 0.0  ;;  %v281_v34 = vadd.f32 %v304_v28, %v280_v32  ;;  %v370_v35 = vpop.f32.mrb[3].mxu1 }
 0x1fb   :  { %286 = vst [vmem:[%s522_s5] sm:$0xff] %v284_v33  ;;  %v285_v36 = vmax.f32 %v281_v34, 0.0 }
 0x1fd   :  { %287 = vst [vmem:[%s522_s5 + $0x8] sm:$0xff] %v285_v36 }
 0x1fe   :  { %292 = vsyncpa [#allocation3], 1 }
 0x1ff   :  { %293 = vsyncpa [#allocation5], 1 }

// kernel: _forward_padded.1
= control target key start
LH: loop header
LB: loop body
LE: loop exit
PB: predicated region body
PF: predicated region fallthrough
CT: control target
= control target key end

     0   :  { %10 = vsyncpa [#allocation3], 0  ;;  %s517_s0 = inlined_call_operand.vmem [shape: bf16[16,128], index: 0, kind: input, shape index: {}]   ;;  %s518_s1 = inlined_call_operand.hbm [shape: bf16[128,128], index: 1, kind: input, shape index: {}]   ;;  %s519_s2 = inlined_call_operand.vmem [shape: f32[1,128], index: 2, kind: input, shape index: {}]   ;;  %s520_s3 = inlined_call_operand.hbm [shape: bf16[128,128], index: 3, kind: input, shape index: {}]   ;;  %s521_s4 = inlined_call_operand.vmem [shape: f32[1,128], index: 4, kind: input, shape index: {}]   ;;  %s522_s5 = inlined_call_operand.vmem [shape: f32[16,128], index: 5, kind: output, shape index: {}]  }
   0x1   :  { %11 = vsyncpa [#allocation5], 0  ;;  %s442_s18 = smov [#allocation2]   ;;  %s394_s22 = scalar_lea.hbm %s518_s1, 1024 }
   0x2   :  { %s19_s19 = sshll.u32 %s442_s18, 4  ;;  %p395_p0 = scmp.ne.s32.totalorder %s518_s1, %s394_s22  ;;  %s20_s19 = int_to_ptr.vmem [resolvable:$true] %s19_s19 }
   0x3   :  { %p398_p1 = scmp.lt.u32.totalorder %s394_s22, %s518_s1 }
   0x5   :  { %p400_p2 = pnand %p398_p1, %p395_p0 }
   0x7   :  { %403 = shalt.err (!%p400_p2)
}
   0x8   :  { %s404_s27 = scalar_lea.vmem %s20_s19, 1024  ;;  %p409_p4 = scmp.lt.s32.totalorder %s20_s19, %s20_s19 }
   0x9   :  { %p405_p3 = scmp.ne.s32.totalorder %s20_s19, %s404_s27  ;;  %p410_p5 = scmp.lt.s32.totalorder %s404_s27, %s404_s27 }
   0xb   :  { %p411_p6 = por %p410_p5, %p409_p4 }
   0xd   :  { %p412_p7 = pnand %p411_p6, %p405_p3 }
   0xf   :  { %415 = shalt.err (!%p412_p7)
}
  0x10   :  { %s443_s28 = smov 64   ;;  %s444_s29 = smov 4  }
  0x11   :  { %25 = dma.hbm_to_vmem [thread:$0]  %s518_s1, 1024, %s20_s19, [#allocation3], %s443_s28, %s443_s28, %s444_s29  }
  0x12   :  { %s445_s7 = smov [#allocation4]   ;;  %s416_s11 = scalar_lea.hbm %s520_s3, 1024 }
  0x13   :  { %s33_s8 = sshll.u32 %s445_s7, 4  ;;  %p417_p8 = scmp.ne.s32.totalorder %s520_s3, %s416_s11  ;;  %s34_s8 = int_to_ptr.vmem [resolvable:$true] %s33_s8 }
  0x14   :  { %p420_p9 = scmp.lt.u32.totalorder %s416_s11, %s520_s3 }
  0x16   :  { %p422_p10 = pnand %p420_p9, %p417_p8 }
  0x18   :  { %425 = shalt.err (!%p422_p10)
}
  0x19   :  { %s426_s16 = scalar_lea.vmem %s34_s8, 1024  ;;  %p431_p12 = scmp.lt.s32.totalorder %s34_s8, %s34_s8 }
  0x1a   :  { %p427_p11 = scmp.ne.s32.totalorder %s34_s8, %s426_s16  ;;  %p432_p13 = scmp.lt.s32.totalorder %s426_s16, %s426_s16 }
  0x1c   :  { %p433_p0 = por %p432_p13, %p431_p12 }
  0x1e   :  { %p434_p1 = pnand %p433_p0, %p427_p11 }
  0x20   :  { %437 = shalt.err (!%p434_p1)
}
  0x21   :  { %39 = dma.hbm_to_vmem [thread:$0]  %s520_s3, 1024, %s34_s8, [#allocation5], %s443_s28, %s443_s28, %s444_s29  }
  0x22   :  { %438 = dma.done.wait [#allocation3], 1024  }
  0x23   :  { %439 = vsyncadd [#allocation3], 4294966272 }
  0x24   :  { %440 = dma.done.wait [#allocation5], 1024  }
  0x25   :  { %441 = vsyncadd [#allocation5], 4294966272  ;;  %v446_v0 = vmov 0.0   ;;  %vm447_vm0 = vmmov 0   ;;  %v377_v1 = vld [vmem:[#allocation2] sm:$0xff]   ;;  %v378_v2 = vld [vmem:[#allocation2 + $0x8] sm:$0xff]  }
  0x26   :  { %331 = vmatprep.subr.bf16.mxu0 %v446_v0  ;;  %347 = vmatprep.mubr.msk.bf16.mxu0 %vm447_vm0, %v446_v0  ;;  %v379_v3 = vld [vmem:[#allocation2 + $0x10] sm:$0xff]   ;;  %v386_v4 = vld [vmem:[#allocation4] sm:$0xff]   ;;  %v380_v5 = vld [vmem:[#allocation2 + $0x18] sm:$0xff]  }
  0x27   :  { %351 = vmatprep.subr.bf16.mxu1 %v446_v0  ;;  %367 = vmatprep.mubr.msk.bf16.mxu1 %vm447_vm0, %v446_v0  ;;  %v387_v6 = vld [vmem:[#allocation4 + $0x8] sm:$0xff]   ;;  %v381_v7 = vld [vmem:[#allocation2 + $0x20] sm:$0xff]   ;;  %v388_v8 = vld [vmem:[#allocation4 + $0x10] sm:$0xff]  }
  0x28   :  { %332 = vmatpush3.bf16.msra.mxu0 %v377_v1  ;;  %352 = vmatpush3.bf16.msra.mxu1 %v386_v4  ;;  %v382_v9 = vld [vmem:[#allocation2 + $0x28] sm:$0xff]   ;;  %v389_v10 = vld [vmem:[#allocation4 + $0x18] sm:$0xff]   ;;  %v383_v11 = vld [vmem:[#allocation2 + $0x30] sm:$0xff]  }
  0x29   :  { %333 = vmatprep.subr.bf16.mxu0 %v446_v0  ;;  %353 = vmatprep.subr.bf16.mxu1 %v446_v0  ;;  %v390_v12 = vld [vmem:[#allocation4 + $0x20] sm:$0xff]   ;;  %v384_v13 = vld [vmem:[#allocation2 + $0x38] sm:$0xff]   ;;  %v391_v14 = vld [vmem:[#allocation4 + $0x28] sm:$0xff]  }
  0x2a   :  { %v385_v15 = vld [vmem:[%s517_s0] sm:$0xff]   ;;  %v392_v16 = vld [vmem:[#allocation4 + $0x30] sm:$0xff]   ;;  %v393_v17 = vld [vmem:[#allocation4 + $0x38] sm:$0xff]  }
  0x2b   :  { %v294_v18 = vld [vmem:[%s519_s2] ss:$0 sm:$0xff] }
  0x2c   :  { %334 = vmatpush3.bf16.msra.mxu0 %v378_v2  ;;  %354 = vmatpush3.bf16.msra.mxu1 %v387_v6  ;;  %v304_v28 = vld [vmem:[%s521_s4] ss:$0 sm:$0xff] }
  0x2d   :  { %335 = vmatprep.subr.bf16.mxu0 %v446_v0  ;;  %355 = vmatprep.subr.bf16.mxu1 %v446_v0 }
  0x30   :  { %336 = vmatpush3.bf16.msra.mxu0 %v379_v3  ;;  %356 = vmatpush3.bf16.msra.mxu1 %v388_v8 }
  0x31   :  { %337 = vmatprep.subr.bf16.mxu0 %v446_v0  ;;  %357 = vmatprep.subr.bf16.mxu1 %v446_v0 }
  0x34   :  { %338 = vmatpush3.bf16.msra.mxu0 %v380_v5  ;;  %358 = vmatpush3.bf16.msra.mxu1 %v389_v10 }
  0x35   :  { %339 = vmatprep.subr.bf16.mxu0 %v446_v0  ;;  %359 = vmatprep.subr.bf16.mxu1 %v446_v0 }
  0x38   :  { %340 = vmatpush3.bf16.msra.mxu0 %v381_v7  ;;  %360 = vmatpush3.bf16.msra.mxu1 %v390_v12 }
  0x39   :  { %341 = vmatprep.subr.bf16.mxu0 %v446_v0  ;;  %361 = vmatprep.subr.bf16.mxu1 %v446_v0 }
  0x3c   :  { %342 = vmatpush3.bf16.msra.mxu0 %v382_v9  ;;  %362 = vmatpush3.bf16.msra.mxu1 %v391_v14 }
  0x3d   :  { %343 = vmatprep.subr.bf16.mxu0 %v446_v0  ;;  %363 = vmatprep.subr.bf16.mxu1 %v446_v0 }
  0x40   :  { %344 = vmatpush3.bf16.msra.mxu0 %v383_v11  ;;  %364 = vmatpush3.bf16.msra.mxu1 %v392_v16 }
  0x41   :  { %345 = vmatprep.subr.bf16.mxu0 %v446_v0  ;;  %365 = vmatprep.subr.bf16.mxu1 %v446_v0 }
  0x44   :  { %346 = vmatpush3.bf16.msra.mxu0 %v384_v13  ;;  %366 = vmatpush3.bf16.msra.mxu1 %v393_v17 }
  0x47   :  { %348 = vmatmul.mubr.bf16.vlgmr.msra.gmra.mrb[0].mxu0 %v385_v15 }
 0x11a   :  { %v162_v19 = vpop.f32.mrb[0].mxu0 }
 0x11b   :  { %v163_v20 = vadd.f32 %v294_v18, %v162_v19  ;;  %v349_v21 = vpop.f32.mrb[1].mxu0 }
 0x11c   :  { %v165_v22 = vpop.f32.mrb[2].mxu0 }
 0x11d   :  { %v166_v23 = vadd.f32 %v294_v18, %v165_v22  ;;  %v350_v24 = vpop.f32.mrb[3].mxu0  ;;  %v169_v25 = vmax.f32 %v163_v20, 0.0 }
 0x11f   :  { %v170_v26 = vmax.f32 %v166_v23, 0.0 }
 0x121   :  { %v171_v27 = vpack.c.bf16 %v170_v26, %v169_v25 }
 0x123   :  { %368 = vmatmul.mubr.bf16.vlgmr.msra.gmra.mrb[0].mxu1 %v171_v27 }
 0x1f6   :  { %v277_v29 = vpop.f32.mrb[0].mxu1 }
 0x1f7   :  { %v278_v30 = vadd.f32 %v304_v28, %v277_v29  ;;  %v369_v31 = vpop.f32.mrb[1].mxu1 }
 0x1f8   :  { %v280_v32 = vpop.f32.mrb[2].mxu1 }
 0x1f9   :  { %v284_v33 = vmax.f32 %v278_v30, 0.0  ;;  %v281_v34 = vadd.f32 %v304_v28, %v280_v32  ;;  %v370_v35 = vpop.f32.mrb[3].mxu1 }
 0x1fb   :  { %286 = vst [vmem:[%s522_s5] sm:$0xff] %v284_v33  ;;  %v285_v36 = vmax.f32 %v281_v34, 0.0 }
 0x1fd   :  { %287 = vst [vmem:[%s522_s5 + $0x8] sm:$0xff] %v285_v36 }
 0x1fe   :  { %292 = vsyncpa [#allocation3], 1 }
 0x1ff   :  { %293 = vsyncpa [#allocation5], 1 }

</bundles_post_ra>
